<compile_context>
chip_gen: v6e
topology: v6e:2x2x1
jax: 0.10.0
libtpu: 0.0.40
codegen_flags: <defaults>
</compile_context>

<pallas_src>
import functools
import math

import jax
import jax.numpy as jnp
from jax.experimental import pallas as pl
from jax.experimental.pallas import tpu as pltpu


def _mha_kernel(x_ref, w_qkv_ref, b_qkv_ref, w_out_ref, b_out_ref, o_ref, ctx_ref,
                *, num_heads, head_dim, compute_dtype):
    # x_ref:     (L, E)    one batch element (lane-aligned column slab of the (L, B*E) view)
    # w_qkv_ref: (E, 3E)   in_proj_weight^T with the Q columns pre-scaled by 1/sqrt(hd)
    # b_qkv_ref: (1, 3E)   in_proj_bias with the Q part pre-scaled
    # w_out_ref: (E, E)    out_proj.weight^T
    # b_out_ref: (1, E)    out_proj.bias
    # o_ref:     (L, E)
    # ctx_ref:   (L, E)    VMEM scratch holding the merged-head context (f32)
    E = num_heads * head_dim
    cd = compute_dtype

    x = x_ref[...].astype(cd)                               # (L, E)
    w_qkv = w_qkv_ref[...].astype(cd)                       # (E, 3E)  (already transposed)

    # QKV projection: one MXU matmul, f32 accumulation. Q is already scaled via the weights.
    qkv = jnp.dot(x, w_qkv, preferred_element_type=jnp.float32) + b_qkv_ref[...]  # (L, 3E)

    for h in range(num_heads):                              # small static unroll over heads
        lo = h * head_dim
        qh = qkv[:, lo:lo + head_dim]                       # (L, hd)  (pre-scaled)
        kh = qkv[:, E + lo:E + lo + head_dim]               # (L, hd)
        vh = qkv[:, 2 * E + lo:2 * E + lo + head_dim]       # (L, hd)

        # scores = q @ k^T: contract the last dim of BOTH operands -> no in-kernel transpose.
        s = jax.lax.dot_general(qh, kh, (((1,), (1,)), ((), ())),
                                preferred_element_type=jnp.float32)   # (L, L)
        s = s - jnp.max(s, axis=-1, keepdims=True)
        p = jnp.exp(s)                                      # un-normalized probabilities
        denom = jnp.sum(p, axis=-1, keepdims=True)          # (L, 1)

        # Deferred softmax normalization: PV matmul first, then a cheap (L, hd) multiply
        # by the EUP approximate reciprocal of the row sums.
        ctx_h = jnp.dot(p.astype(cd), vh.astype(cd),
                        preferred_element_type=jnp.float32)           # (L, hd)
        ctx_ref[:, lo:lo + head_dim] = ctx_h * pl.reciprocal(denom, approx=True)

    # Output projection on the merged heads (weights pre-transposed -> plain matmul).
    out = jnp.dot(ctx_ref[...].astype(cd), w_out_ref[...].astype(cd),
                  preferred_element_type=jnp.float32) + b_out_ref[...]
    o_ref[...] = out.astype(o_ref.dtype)


def multihead_self_attention(x, w_in, b_in, w_out, b_out, *, num_heads,
                             compute_dtype=jnp.float32):
    """x: (L, B, E) -> (L, B, E)   (same semantics as nn.MultiheadAttention(x, x, x)[0])."""
    L, B, E = x.shape
    assert E % num_heads == 0
    head_dim = E // num_heads
    # Batch elements are addressed as lane-aligned column slabs of a collapsed (L, B*E)
    # view, which needs E to be a multiple of the 128-lane width when B > 1.
    assert B == 1 or E % 128 == 0, "embed_dim must be a multiple of 128 (TPU lane width) for B > 1"

    scale = 1.0 / math.sqrt(head_dim)

    # One-time (wrapper-side) weight prep: transpose so the kernel never transposes, and
    # fold the attention scale into the Q projection weight/bias.
    w_q, w_k, w_v = w_in[:E], w_in[E:2 * E], w_in[2 * E:]
    w_qkv_t = jnp.concatenate([w_q.T * scale, w_k.T, w_v.T], axis=1)          # (E, 3E)
    b_qkv = jnp.concatenate([b_in[:E] * scale, b_in[E:]]).reshape(1, 3 * E)   # (1, 3E)
    w_out_t = w_out.T                                                         # (E, E)
    b_out_2d = b_out.reshape(1, E)

    # Free (no-copy) collapse of the trailing dims: (L, B, E) -> (L, B*E).  Each batch's
    # features are a contiguous column block, so no HBM transpose of activations is needed.
    x2 = x.reshape(L, B * E)

    kernel = functools.partial(_mha_kernel, num_heads=num_heads,
                               head_dim=head_dim, compute_dtype=compute_dtype)

    out2 = pl.pallas_call(
        kernel,
        out_shape=jax.ShapeDtypeStruct((L, B * E), x.dtype),
        grid_spec=pltpu.PrefetchScalarGridSpec(
            num_scalar_prefetch=0,
            grid=(B,),
            in_specs=[
                pl.BlockSpec((L, E), lambda b: (0, b)),            # x: batch b column slab
                pl.BlockSpec((E, 3 * E), lambda b: (0, 0)),        # W_qkv^T (grid-invariant)
                pl.BlockSpec((1, 3 * E), lambda b: (0, 0)),        # b_qkv
                pl.BlockSpec((E, E), lambda b: (0, 0)),            # W_out^T
                pl.BlockSpec((1, E), lambda b: (0, 0)),            # b_out
            ],
            out_specs=pl.BlockSpec((L, E), lambda b: (0, b)),
            scratch_shapes=[pltpu.VMEM((L, E), jnp.float32)],      # merged-head ctx buffer
        ),
        compiler_params=pltpu.CompilerParams(
            dimension_semantics=("parallel",)),                    # batch -> both TCs on v7x
    )(x2, w_qkv_t, b_qkv, w_out_t, b_out_2d)

    return out2.reshape(L, B, E)


def _reference_mha(x, w_in, b_in, w_out, b_out, *, num_heads):
    """Pure-JAX reference matching torch.nn.MultiheadAttention forward (no mask/dropout)."""
    L, B, E = x.shape
    hd = E // num_heads
    qkv = jnp.einsum("lbe,fe->lbf", x, w_in) + b_in            # (L, B, 3E)
    q, k, v = jnp.split(qkv, 3, axis=-1)

    def split_heads(t):
        return t.reshape(L, B, num_heads, hd).transpose(1, 2, 0, 3)  # (B, H, L, hd)

    q, k, v = split_heads(q), split_heads(k), split_heads(v)
    s = jnp.einsum("bhld,bhmd->bhlm", q, k) / math.sqrt(hd)
    p = jax.nn.softmax(s, axis=-1)
    ctx = jnp.einsum("bhlm,bhmd->bhld", p, v)                  # (B, H, L, hd)
    ctx = ctx.transpose(2, 0, 1, 3).reshape(L, B, E)
    return jnp.einsum("lbe,fe->lbf", ctx, w_out) + b_out


if __name__ == "__main__":
    # Small shapes: seq=8, batch=2.  embed_dim=128 (not 32) so per-batch slabs and the
    # output stores are lane-dense (128 lanes), per the performance review; heads=4.
    L, B, E, H = 8, 2, 128, 4

    key = jax.random.PRNGKey(0)
    kx, kw_in, kb_in, kw_out, kb_out = jax.random.split(key, 5)

    x = jax.random.normal(kx, (L, B, E), dtype=jnp.float32)

    # Deterministic parameter init (shapes match nn.MultiheadAttention internals):
    #   in_proj_weight (3E, E), in_proj_bias (3E,), out_proj.weight (E, E), out_proj.bias (E,)
    xavier = math.sqrt(6.0 / (E + 3 * E))
    w_in = jax.random.uniform(kw_in, (3 * E, E), jnp.float32, -xavier, xavier)
    b_in = jax.random.normal(kb_in, (3 * E,), dtype=jnp.float32) * 0.02
    w_out = jax.random.uniform(kw_out, (E, E), jnp.float32,
                               -math.sqrt(6.0 / (2 * E)), math.sqrt(6.0 / (2 * E)))
    b_out = jax.random.normal(kb_out, (E,), dtype=jnp.float32) * 0.02

    out = multihead_self_attention(x, w_in, b_in, w_out, b_out, num_heads=H)
    out = jax.block_until_ready(out)

    ref = _reference_mha(x, w_in, b_in, w_out, b_out, num_heads=H)
    assert out.shape == (L, B, E)
    # Tolerance accounts for the EUP approximate-reciprocal softmax normalization.
    assert jnp.allclose(out, ref, atol=2e-3, rtol=2e-3), "Pallas output mismatch vs reference"

    print("KERNEL_OK")
</pallas_src>

<mosaic_0001>
module attributes {stable_mosaic.version = 11 : i64} {
  func.func @_mha_kernel(%arg0: i32, %arg1: memref<8x128xf32, #tpu.memory_space<vmem>>, %arg2: memref<128x384xf32, #tpu.memory_space<vmem>>, %arg3: memref<1x384xf32, #tpu.memory_space<vmem>>, %arg4: memref<128x128xf32, #tpu.memory_space<vmem>>, %arg5: memref<1x128xf32, #tpu.memory_space<vmem>>, %arg6: memref<8x128xf32, #tpu.memory_space<vmem>>, %arg7: memref<8x128xf32, #tpu.memory_space<vmem>>) attributes {dimension_semantics = [#tpu.dimension_semantics<parallel>], iteration_bounds = array<i64: 2>, scalar_prefetch = 0 : i64, scratch_operands = 1 : i64, tpu.core_type = #tpu.core_type<tc>, window_params = [{transform_indices = @transform_0, window_bounds = array<i64: 8, 128>}, {pipeline_mode = #tpu.pipeline_mode<synchronous>, transform_indices = @transform_1, window_bounds = array<i64: 128, 384>}, {pipeline_mode = #tpu.pipeline_mode<synchronous>, transform_indices = @transform_2, window_bounds = array<i64: 1, 384>}, {pipeline_mode = #tpu.pipeline_mode<synchronous>, transform_indices = @transform_3, window_bounds = array<i64: 128, 128>}, {pipeline_mode = #tpu.pipeline_mode<synchronous>, transform_indices = @transform_4, window_bounds = array<i64: 1, 128>}, {transform_indices = @transform_5, window_bounds = array<i64: 8, 128>}]} {
    %c0 = arith.constant 0 : index
    %c0_0 = arith.constant 0 : index
    %0 = vector.load %arg1[%c0, %c0_0] : memref<8x128xf32, #tpu.memory_space<vmem>>, vector<8x128xf32>
    %c0_1 = arith.constant 0 : index
    %c0_2 = arith.constant 0 : index
    %1 = vector.load %arg2[%c0_1, %c0_2] : memref<128x384xf32, #tpu.memory_space<vmem>>, vector<128x384xf32>
    %cst = arith.constant dense<0.000000e+00> : vector<8x384xf32>
    %2 = tpu.matmul %0, %1, %cst {dimension_numbers = #tpu.dot_dimension_numbers<[1], [0], [0], [1], [0, 0, 1, 1], [], []>} : vector<8x128xf32>, vector<128x384xf32>, vector<8x384xf32> -> vector<8x384xf32>
    %c0_3 = arith.constant 0 : index
    %c0_4 = arith.constant 0 : index
    %3 = vector.load %arg3[%c0_3, %c0_4] : memref<1x384xf32, #tpu.memory_space<vmem>>, vector<1x384xf32>
    %4 = vector.broadcast %3 : vector<1x384xf32> to vector<8x384xf32>
    %5 = arith.addf %2, %4 : vector<8x384xf32>
    %6 = vector.extract_strided_slice %5 {offsets = [0, 0], sizes = [8, 32], strides = [1, 1]} : vector<8x384xf32> to vector<8x32xf32>
    %7 = vector.extract_strided_slice %5 {offsets = [0, 128], sizes = [8, 32], strides = [1, 1]} : vector<8x384xf32> to vector<8x32xf32>
    %8 = vector.extract_strided_slice %5 {offsets = [0, 256], sizes = [8, 32], strides = [1, 1]} : vector<8x384xf32> to vector<8x32xf32>
    %cst_5 = arith.constant dense<0.000000e+00> : vector<8x8xf32>
    %9 = tpu.matmul %6, %7, %cst_5 {dimension_numbers = #tpu.dot_dimension_numbers<[1], [1], [0], [0], [0, 0, 1, 0], [], []>} : vector<8x32xf32>, vector<8x32xf32>, vector<8x8xf32> -> vector<8x8xf32>
    %cst_6 = arith.constant dense<0xFF800000> : vector<8xf32>
    %10 = vector.multi_reduction <maximumf>, %9, %cst_6 [1] : vector<8x8xf32> to vector<8xf32>
    %11 = vector.shape_cast %10 : vector<8xf32> to vector<8x1xf32>
    %12 = vector.broadcast %11 : vector<8x1xf32> to vector<8x8xf32>
    %13 = arith.subf %9, %12 : vector<8x8xf32>
    %14 = math.exp %13 : vector<8x8xf32>
    %cst_7 = arith.constant dense<0.000000e+00> : vector<8xf32>
    %15 = vector.multi_reduction <add>, %14, %cst_7 [1] : vector<8x8xf32> to vector<8xf32>
    %16 = vector.shape_cast %15 : vector<8xf32> to vector<8x1xf32>
    %cst_8 = arith.constant dense<0.000000e+00> : vector<8x32xf32>
    %17 = tpu.matmul %14, %8, %cst_8 {dimension_numbers = #tpu.dot_dimension_numbers<[1], [0], [0], [1], [0, 0, 1, 1], [], []>} : vector<8x8xf32>, vector<8x32xf32>, vector<8x32xf32> -> vector<8x32xf32>
    %18 = tpu.reciprocal %16 {approx = true} : vector<8x1xf32> -> vector<8x1xf32>
    %19 = vector.broadcast %18 : vector<8x1xf32> to vector<8x32xf32>
    %20 = arith.mulf %17, %19 : vector<8x32xf32>
    %c0_9 = arith.constant 0 : index
    %c0_10 = arith.constant 0 : index
    %21 = vector.load %arg7[%c0_9, %c0_10] : memref<8x128xf32, #tpu.memory_space<vmem>>, vector<8x32xf32>
    tpu.vector_store %arg7[%c0_9, %c0_10], %20 {strides = array<i32>} : memref<8x128xf32, #tpu.memory_space<vmem>>, vector<8x32xf32>,
    %22 = vector.extract_strided_slice %5 {offsets = [0, 32], sizes = [8, 32], strides = [1, 1]} : vector<8x384xf32> to vector<8x32xf32>
    %23 = vector.extract_strided_slice %5 {offsets = [0, 160], sizes = [8, 32], strides = [1, 1]} : vector<8x384xf32> to vector<8x32xf32>
    %24 = vector.extract_strided_slice %5 {offsets = [0, 288], sizes = [8, 32], strides = [1, 1]} : vector<8x384xf32> to vector<8x32xf32>
    %cst_11 = arith.constant dense<0.000000e+00> : vector<8x8xf32>
    %25 = tpu.matmul %22, %23, %cst_11 {dimension_numbers = #tpu.dot_dimension_numbers<[1], [1], [0], [0], [0, 0, 1, 0], [], []>} : vector<8x32xf32>, vector<8x32xf32>, vector<8x8xf32> -> vector<8x8xf32>
    %cst_12 = arith.constant dense<0xFF800000> : vector<8xf32>
    %26 = vector.multi_reduction <maximumf>, %25, %cst_12 [1] : vector<8x8xf32> to vector<8xf32>
    %27 = vector.shape_cast %26 : vector<8xf32> to vector<8x1xf32>
    %28 = vector.broadcast %27 : vector<8x1xf32> to vector<8x8xf32>
    %29 = arith.subf %25, %28 : vector<8x8xf32>
    %30 = math.exp %29 : vector<8x8xf32>
    %cst_13 = arith.constant dense<0.000000e+00> : vector<8xf32>
    %31 = vector.multi_reduction <add>, %30, %cst_13 [1] : vector<8x8xf32> to vector<8xf32>
    %32 = vector.shape_cast %31 : vector<8xf32> to vector<8x1xf32>
    %cst_14 = arith.constant dense<0.000000e+00> : vector<8x32xf32>
    %33 = tpu.matmul %30, %24, %cst_14 {dimension_numbers = #tpu.dot_dimension_numbers<[1], [0], [0], [1], [0, 0, 1, 1], [], []>} : vector<8x8xf32>, vector<8x32xf32>, vector<8x32xf32> -> vector<8x32xf32>
    %34 = tpu.reciprocal %32 {approx = true} : vector<8x1xf32> -> vector<8x1xf32>
    %35 = vector.broadcast %34 : vector<8x1xf32> to vector<8x32xf32>
    %36 = arith.mulf %33, %35 : vector<8x32xf32>
    %c0_15 = arith.constant 0 : index
    %c32 = arith.constant 32 : index
    %37 = vector.load %arg7[%c0_15, %c32] : memref<8x128xf32, #tpu.memory_space<vmem>>, vector<8x32xf32>
    tpu.vector_store %arg7[%c0_15, %c32], %36 {strides = array<i32>} : memref<8x128xf32, #tpu.memory_space<vmem>>, vector<8x32xf32>,
    %38 = vector.extract_strided_slice %5 {offsets = [0, 64], sizes = [8, 32], strides = [1, 1]} : vector<8x384xf32> to vector<8x32xf32>
    %39 = vector.extract_strided_slice %5 {offsets = [0, 192], sizes = [8, 32], strides = [1, 1]} : vector<8x384xf32> to vector<8x32xf32>
    %40 = vector.extract_strided_slice %5 {offsets = [0, 320], sizes = [8, 32], strides = [1, 1]} : vector<8x384xf32> to vector<8x32xf32>
    %cst_16 = arith.constant dense<0.000000e+00> : vector<8x8xf32>
    %41 = tpu.matmul %38, %39, %cst_16 {dimension_numbers = #tpu.dot_dimension_numbers<[1], [1], [0], [0], [0, 0, 1, 0], [], []>} : vector<8x32xf32>, vector<8x32xf32>, vector<8x8xf32> -> vector<8x8xf32>
    %cst_17 = arith.constant dense<0xFF800000> : vector<8xf32>
    %42 = vector.multi_reduction <maximumf>, %41, %cst_17 [1] : vector<8x8xf32> to vector<8xf32>
    %43 = vector.shape_cast %42 : vector<8xf32> to vector<8x1xf32>
    %44 = vector.broadcast %43 : vector<8x1xf32> to vector<8x8xf32>
    %45 = arith.subf %41, %44 : vector<8x8xf32>
    %46 = math.exp %45 : vector<8x8xf32>
    %cst_18 = arith.constant dense<0.000000e+00> : vector<8xf32>
    %47 = vector.multi_reduction <add>, %46, %cst_18 [1] : vector<8x8xf32> to vector<8xf32>
    %48 = vector.shape_cast %47 : vector<8xf32> to vector<8x1xf32>
    %cst_19 = arith.constant dense<0.000000e+00> : vector<8x32xf32>
    %49 = tpu.matmul %46, %40, %cst_19 {dimension_numbers = #tpu.dot_dimension_numbers<[1], [0], [0], [1], [0, 0, 1, 1], [], []>} : vector<8x8xf32>, vector<8x32xf32>, vector<8x32xf32> -> vector<8x32xf32>
    %50 = tpu.reciprocal %48 {approx = true} : vector<8x1xf32> -> vector<8x1xf32>
    %51 = vector.broadcast %50 : vector<8x1xf32> to vector<8x32xf32>
    %52 = arith.mulf %49, %51 : vector<8x32xf32>
    %c0_20 = arith.constant 0 : index
    %c64 = arith.constant 64 : index
    %53 = vector.load %arg7[%c0_20, %c64] : memref<8x128xf32, #tpu.memory_space<vmem>>, vector<8x32xf32>
    tpu.vector_store %arg7[%c0_20, %c64], %52 {strides = array<i32>} : memref<8x128xf32, #tpu.memory_space<vmem>>, vector<8x32xf32>,
    %54 = vector.extract_strided_slice %5 {offsets = [0, 96], sizes = [8, 32], strides = [1, 1]} : vector<8x384xf32> to vector<8x32xf32>
    %55 = vector.extract_strided_slice %5 {offsets = [0, 224], sizes = [8, 32], strides = [1, 1]} : vector<8x384xf32> to vector<8x32xf32>
    %56 = vector.extract_strided_slice %5 {offsets = [0, 352], sizes = [8, 32], strides = [1, 1]} : vector<8x384xf32> to vector<8x32xf32>
    %cst_21 = arith.constant dense<0.000000e+00> : vector<8x8xf32>
    %57 = tpu.matmul %54, %55, %cst_21 {dimension_numbers = #tpu.dot_dimension_numbers<[1], [1], [0], [0], [0, 0, 1, 0], [], []>} : vector<8x32xf32>, vector<8x32xf32>, vector<8x8xf32> -> vector<8x8xf32>
    %cst_22 = arith.constant dense<0xFF800000> : vector<8xf32>
    %58 = vector.multi_reduction <maximumf>, %57, %cst_22 [1] : vector<8x8xf32> to vector<8xf32>
    %59 = vector.shape_cast %58 : vector<8xf32> to vector<8x1xf32>
    %60 = vector.broadcast %59 : vector<8x1xf32> to vector<8x8xf32>
    %61 = arith.subf %57, %60 : vector<8x8xf32>
    %62 = math.exp %61 : vector<8x8xf32>
    %cst_23 = arith.constant dense<0.000000e+00> : vector<8xf32>
    %63 = vector.multi_reduction <add>, %62, %cst_23 [1] : vector<8x8xf32> to vector<8xf32>
    %64 = vector.shape_cast %63 : vector<8xf32> to vector<8x1xf32>
    %cst_24 = arith.constant dense<0.000000e+00> : vector<8x32xf32>
    %65 = tpu.matmul %62, %56, %cst_24 {dimension_numbers = #tpu.dot_dimension_numbers<[1], [0], [0], [1], [0, 0, 1, 1], [], []>} : vector<8x8xf32>, vector<8x32xf32>, vector<8x32xf32> -> vector<8x32xf32>
    %66 = tpu.reciprocal %64 {approx = true} : vector<8x1xf32> -> vector<8x1xf32>
    %67 = vector.broadcast %66 : vector<8x1xf32> to vector<8x32xf32>
    %68 = arith.mulf %65, %67 : vector<8x32xf32>
    %c0_25 = arith.constant 0 : index
    %c96 = arith.constant 96 : index
    %69 = vector.load %arg7[%c0_25, %c96] : memref<8x128xf32, #tpu.memory_space<vmem>>, vector<8x32xf32>
    tpu.vector_store %arg7[%c0_25, %c96], %68 {strides = array<i32>} : memref<8x128xf32, #tpu.memory_space<vmem>>, vector<8x32xf32>,
    %c0_26 = arith.constant 0 : index
    %c0_27 = arith.constant 0 : index
    %70 = vector.load %arg7[%c0_26, %c0_27] : memref<8x128xf32, #tpu.memory_space<vmem>>, vector<8x128xf32>
    %c0_28 = arith.constant 0 : index
    %c0_29 = arith.constant 0 : index
    %71 = vector.load %arg4[%c0_28, %c0_29] : memref<128x128xf32, #tpu.memory_space<vmem>>, vector<128x128xf32>
    %cst_30 = arith.constant dense<0.000000e+00> : vector<8x128xf32>
    %72 = tpu.matmul %70, %71, %cst_30 {dimension_numbers = #tpu.dot_dimension_numbers<[1], [0], [0], [1], [0, 0, 1, 1], [], []>} : vector<8x128xf32>, vector<128x128xf32>, vector<8x128xf32> -> vector<8x128xf32>
    %c0_31 = arith.constant 0 : index
    %c0_32 = arith.constant 0 : index
    %73 = vector.load %arg5[%c0_31, %c0_32] : memref<1x128xf32, #tpu.memory_space<vmem>>, vector<1x128xf32>
    %74 = vector.broadcast %73 : vector<1x128xf32> to vector<8x128xf32>
    %75 = arith.addf %72, %74 : vector<8x128xf32>
    %c0_33 = arith.constant 0 : index
    %c0_34 = arith.constant 0 : index
    %76 = vector.load %arg6[%c0_33, %c0_34] : memref<8x128xf32, #tpu.memory_space<vmem>>, vector<8x128xf32>
    tpu.vector_store %arg6[%c0_33, %c0_34], %75 {strides = array<i32>} : memref<8x128xf32, #tpu.memory_space<vmem>>, vector<8x128xf32>,
    return
  }
  func.func @transform_0(%arg0: i32) -> (i32, i32) {
    %c0_i32 = arith.constant 0 : i32
    %c0_i32_0 = arith.constant 0 : i32
    return %c0_i32, %arg0 : i32, i32
  }
  func.func @transform_1(%arg0: i32) -> (i32, i32) {
    %c0_i32 = arith.constant 0 : i32
    %c0_i32_0 = arith.constant 0 : i32
    %c0_i32_1 = arith.constant 0 : i32
    return %c0_i32, %c0_i32_0 : i32, i32
  }
  func.func @transform_2(%arg0: i32) -> (i32, i32) {
    %c0_i32 = arith.constant 0 : i32
    %c0_i32_0 = arith.constant 0 : i32
    %c0_i32_1 = arith.constant 0 : i32
    return %c0_i32, %c0_i32_0 : i32, i32
  }
  func.func @transform_3(%arg0: i32) -> (i32, i32) {
    %c0_i32 = arith.constant 0 : i32
    %c0_i32_0 = arith.constant 0 : i32
    %c0_i32_1 = arith.constant 0 : i32
    return %c0_i32, %c0_i32_0 : i32, i32
  }
  func.func @transform_4(%arg0: i32) -> (i32, i32) {
    %c0_i32 = arith.constant 0 : i32
    %c0_i32_0 = arith.constant 0 : i32
    %c0_i32_1 = arith.constant 0 : i32
    return %c0_i32, %c0_i32_0 : i32, i32
  }
  func.func @transform_5(%arg0: i32) -> (i32, i32) {
    %c0_i32 = arith.constant 0 : i32
    %c0_i32_0 = arith.constant 0 : i32
    return %c0_i32, %arg0 : i32, i32
  }
}

</mosaic_0001>

<bundles_post_ra>
// kernel: tpu_custom_call.1
= control target key start
LH: loop header
LB: loop body
LE: loop exit
PB: predicated region body
PF: predicated region fallthrough
CT: control target
= control target key end

     0   :  { %10 = vsyncpa [#allocation4], 0  ;;  %s2110_s0 = inlined_call_operand.hbm [shape: f32[8,256], index: 0, kind: input, shape index: {}]   ;;  %s2111_s1 = inlined_call_operand.hbm [shape: f32[128,384], index: 1, kind: input, shape index: {}]   ;;  %s2112_s2 = inlined_call_operand.vmem [shape: f32[1,384], index: 2, kind: input, shape index: {}]   ;;  %s2113_s3 = inlined_call_operand.hbm [shape: f32[128,128], index: 3, kind: input, shape index: {}]   ;;  %s2114_s4 = inlined_call_operand.vmem [shape: f32[1,128], index: 4, kind: input, shape index: {}]   ;;  %s2115_s5 = inlined_call_operand.hbm [shape: f32[8,256], index: 5, kind: output, shape index: {}]  }
   0x1   :  { %12 = vsyncpa [#allocation4 + $0x1], 0 }
   0x2   :  { %13 = vsyncpa [#allocation7], 0 }
   0x3   :  { %14 = vsyncpa [#allocation5], 0 }
   0x4   :  { %16 = vsyncpa [#allocation5 + $0x1], 0  ;;  %s1825_s18 = smov 0   ;;  %s1827_s19 = smov 0  }
   0x5   :  { %s1829_s20 = smov 0   ;;  %s1831_s21 = smov 0  }
   0x6 LB: > { %s1846_s22 = sadd.s32 4294967295, %s1780_s21   ;;  %s1351_s23 = sadd.s32 4294967294, %s1780_s21   ;;  %s1780_s21 = sphi %s1831_s21, %s2137_s21   ;;  %s1776_s20 = sphi %s1829_s20, %s2136_s20   ;;  %s1772_s19 = sphi %s1827_s19, %s2135_s19   ;;  %s1768_s18 = sphi %s1825_s18, %s2134_s18  }
   0x7   : > { %p42_p0 = scmp.ne.s32.totalorder %s1772_s19, %s1768_s18  ;;  %p2116_p1 = scmp.eq.s32.totalorder %s1846_s22, 0 }
   0x8   : > { %p156_p3 = scmp.eq.s32.totalorder %s1351_s23, 1  ;;  %p1352_p5 = scmp.ge.s32.totalorder %s1780_s21, 1 }
   0x9   : > { %p1855_p4 = por %p2116_p1, %p42_p0  ;;  %p163_p7 = scmp.lt.s32.totalorder %s1780_s21, 3 }
   0xa   : > { %p1860_p6 = por %p156_p3, %p42_p0  ;;  %s1782_s27 = smov [#allocation6]  }
   0xb   : > { %s2120_s24 = scalar_select %p1855_p4, 1, 0 }
   0xc   : > { %s2121_s25 = scalar_select %p1860_p6, 1, 0 }
   0xd   : > { %p1865_p8 = pnand %p1352_p5, %p163_p7  ;;  %s175_s28 = sshll.u32 %s1782_s27, 4  ;;  %s176_s28 = int_to_ptr.vmem [resolvable:$true] %s175_s28 }
   0xe   : > { %s1783_s30 = smov [#allocation8]   ;;  %s1643_s7 = scalar_lea.vmem %s176_s28, 6144 }
   0xf   : > { %s2122_s26 = scalar_select %p1865_p8, 1, 0 }
  0x10   : > { %p1552_p9 = pneg %p1865_p8  ;;  %s191_s6 = sshll.u32 %s1783_s30, 4  ;;  %s192_s6 = int_to_ptr.vmem [resolvable:$true] %s191_s6 }
  0x11   : > { %p1644_p13 = scmp.ne.s32.totalorder %s176_s28, %s1643_s7  ;;  %p1651_p5 = scmp.lt.s32.totalorder %s176_s28, %s176_s28 }
  0x12   : > { %p1874_p11 = pnand %p1552_p9, %p2116_p1  ;;  %p1652_p7 = scmp.lt.s32.totalorder %s1643_s7, %s1643_s7 }
  0x14   : > { %p1634_p12 = pneg %p1874_p11  ;;  %p1653_p10 = por %p1652_p7, %p1651_p5 }
  0x16   : > { %p1646_p0 = pnand %p1644_p13, %p1634_p12 }
  0x18   : > { %p1647_p3 = pneg %p1646_p0 }
  0x1a   : > { %p1654_p9 = pnand %p1653_p10, %p1647_p3 }
  0x1c   : > { %1657 = shalt.err (!%p1654_p9)
}
  0x1d   : > { %s1784_s8 = smov 384   ;;  %s1785_s9 = smov 24  }
  0x1e   : > { %1555 = dma.hbm_to_vmem [thread:$0]  (!%p1874_p11), %s2111_s1, 6144, %s176_s28, [#allocation7], %s1784_s8, %s1784_s8, %s1785_s9  }
  0x1f   : > { %s1669_s12 = scalar_lea.vmem %s192_s6, 2048  ;;  %p1677_p2 = scmp.lt.s32.totalorder %s192_s6, %s192_s6 }
  0x20   : > { %p1670_p1 = scmp.ne.s32.totalorder %s192_s6, %s1669_s12  ;;  %p1678_p6 = scmp.lt.s32.totalorder %s1669_s12, %s1669_s12 }
  0x22   : > { %p1672_p13 = pnand %p1670_p1, %p1634_p12  ;;  %p1679_p5 = por %p1678_p6, %p1677_p2 }
  0x24   : > { %p1673_p0 = pneg %p1672_p13 }
  0x26   : > { %p1680_p10 = pnand %p1679_p5, %p1673_p0 }
  0x28   : > { %1683 = shalt.err (!%p1680_p10)
}
  0x29   : > { %s1786_s13 = smov 128   ;;  %s1787_s14 = smov 8  }
  0x2a   : > { %1558 = dma.hbm_to_vmem [thread:$0]  (!%p1874_p11), %s2113_s3, 2048, %s192_s6, [#allocation7], %s1786_s13, %s1786_s13, %s1787_s14  }
  0x2b   : > { %s1897_s17 = sadd.s32 1, %s1780_s21   ;;  %s29_s27 = sadd.s32 1, %s1776_s20 }
  0x2c   : > { %s26_s23 = ssub.s32 %s1780_s21, %s1897_s17  ;;  %p36_p2 = scmp.ne.s32.totalorder %s1776_s20, %s1772_s19 }
  0x2d   : > { %p27_p1 = scmp.eq.s32.totalorder %s26_s23, 0  ;;  %p37_p6 = scmp.eq.s32.totalorder %s1780_s21, 0 }
  0x2e   : > { %p2124_p3 = scmp.eq.s32.totalorder %s1846_s22, 1  ;;  %p1569_p9 = scmp.lt.s32.totalorder %s1780_s21, 2 }
  0x2f   : > { %s1906_s28 = scalar_select %p27_p1, %s1776_s20, %s29_s27  }
  0x30   : > { %p38_p12 = por %p37_p6, %p36_p2  ;;  %p1910_p7 = por %p2124_p3, %p36_p2 }
  0x31   : > { %s208_s29 = sand.u32 1, %s1776_s20   ;;  %s1357_s6 = sshll.u32 %s1780_s21, 7 }
  0x32   : > { %s2125_s30 = scalar_select %p1910_p7, 1, 0 }
  0x33   : > { %s1356_s7 = sshll.u32 %s208_s29, 3  ;;  %s1920_s10 = scalar_lea.hbm %s2110_s0, %s1357_s6 }
  0x34   : > { %s212_s11 = scalar_lea.vmem [#allocation3], %s1356_s7  ;;  %p1922_p11 = pnand %p1569_p9, %p38_p12 }
  0x35   : > { %s219_s12 = sshll.u32 %s212_s11, 4  ;;  %s209_s14 = scalar_lea.sflag [#allocation4], %s208_s29  ;;  %s220_s12 = int_to_ptr.vmem [resolvable:$true] %s219_s12 }
  0x36   : > { %s1684_s15 = scalar_lea.hbm %s1920_s10, 128  ;;  %p1686_p0 = pneg %p1922_p11 }
  0x37   : > { %p1685_p13 = scmp.ne.s32.totalorder %s1920_s10, %s1684_s15  ;;  %s1689_s27 = scalar_lea.hbm %s2110_s0, 256 }
  0x38   : > { %p1690_p1 = scmp.lt.s32.totalorder %s1920_s10, %s2110_s0  ;;  %p1691_p2 = scmp.lt.s32.totalorder %s1689_s27, %s1684_s15 }
  0x39   : > { %p1687_p5 = pnand %p1686_p0, %p1685_p13 }
  0x3a   : > { %p1692_p6 = por %p1691_p2, %p1690_p1 }
  0x3b   : > { %p1688_p10 = pneg %p1687_p5 }
  0x3d   : > { %p1693_p12 = pnand %p1692_p6, %p1688_p10 }
  0x3f   : > { %1696 = shalt.err (!%p1693_p12)
}
  0x40   : > { %s1697_s8 = scalar_lea.vmem %s220_s12, 128  ;;  %s1788_s29 = smov [#allocation3]  }
  0x41   : > { %p1698_p3 = scmp.ne.s32.totalorder %s220_s12, %s1697_s8  ;;  %s1702_s9 = sshll.u32 %s1788_s29, 4  ;;  %s1703_s9 = int_to_ptr.vmem [resolvable:$false] %s1702_s9 }
  0x42   : > { %s1704_s11 = scalar_lea.vmem %s1703_s9, 256  ;;  %p1705_p13 = scmp.lt.s32.totalorder %s220_s12, %s1703_s9 }
  0x43   : > { %p1700_p9 = pnand %p1698_p3, %p1686_p0  ;;  %p1706_p5 = scmp.lt.s32.totalorder %s1704_s11, %s1697_s8 }
  0x45   : > { %p1701_p7 = pneg %p1700_p9  ;;  %p1707_p4 = por %p1706_p5, %p1705_p13 }
  0x47   : > { %p1708_p8 = pnand %p1707_p4, %p1701_p7 }
  0x49   : > { %1711 = shalt.err (!%p1708_p8)
}
  0x4a   : > { %1562 = dma.hbm_to_vmem [thread:$0]  (!%p1922_p11), %s1920_s10, 128, %s220_s12, %s209_s14  }
  0x4b   : > { %p2127_p10 = scmp.ne.s32.totalorder %s2122_s26, 0 }
  0x4c   : > { %s1943_s15 = sand.u32 (!%p2127_p10), 1, %s1772_s19   ;;  %p2128_p4 = scmp.ne.s32.totalorder (!%p2127_p10), %s2120_s24, 0 }
  0x4d   : > { %228 = sbr.rel (%p2127_p10) target bundleno = 2258 (0x8d2), region = 40  ;;  %s1359_s16 = sshll.u32 (!%p2127_p10), %s1943_s15, 3 }
  0x4e   : > { %s231_s23 = scalar_lea.sflag (!%p2127_p10), [#allocation4], %s1943_s15  ;;  %s1949_s27 = scalar_lea.vmem (!%p2127_p10), [#allocation3], %s1359_s16 }
  0x52   : > { %1755 = dma.done.wait (%p2128_p4), %s231_s23, 128  }
  0x53   : > { %1757 = vsyncadd (%p2128_p4), %s231_s23, 4294967168  ;;  %p2129_p8 = scmp.eq.s32.totalorder %s1846_s22, 0 }
  0x55   : > { %1759 = dma.done.wait (%p2129_p8), [#allocation7], 8192   ;;  %p2130_p7 = pmov %p2129_p8 }
  0x56   : > { %v1789_v0 = vmov 0.0   ;;  %v316_v1 = vld [vmem:[#allocation6 + $0x170] sm:$0xff]  ;;  %v315_v2 = vld [vmem:[#allocation6 + $0x168] sm:$0xff]  ;;  %v313_v3 = vld [vmem:[#allocation6 + $0x158] sm:$0xff]  ;;  %vm1790_vm0 = vmmov 0   ;;  %v320_v50 = vlaneseq  ;;  %vm476_vm1 = vcmask 261120  }
  0x57   : > { %1761 = vsyncadd (%p2130_p7), [#allocation7], 4294959104  ;;  %399 = vmatprep.mubr.f32.mxu0 %v1789_v0  ;;  %1430 = vmatprep.subr.mxu1 %v1789_v0  ;;  %v312_v4 = vld [vmem:[#allocation6 + $0x150] sm:$0xff]  ;;  %v310_v5 = vld [vmem:[#allocation6 + $0x140] sm:$0xff]  ;;  %s1791_s10 = smov 96   ;;  %vm553_vm2 = vcmask 64512  }
  0x58   : > { %335 = vmatprep.subr.mxu0 %v316_v1  ;;  %v309_v6 = vld [vmem:[#allocation6 + $0x138] sm:$0xff]  ;;  %v307_v7 = vld [vmem:[#allocation6 + $0x128] sm:$0xff]  ;;  %v306_v8 = vld [vmem:[#allocation6 + $0x120] sm:$0xff]  ;;  %1462 = vmatprep.mubr.msk.f32.mxu1 %vm1790_vm0, %v1789_v0  ;;  %v321_v51 = vshrl.u32 %v320_v50, 7  ;;  %s1792_s12 = smov 64   ;;  %s1793_s13 = smov 32  }
  0x59   : > { %336 = vmatpush1.msra.mxu0 %v315_v2  ;;  %v304_v9 = vld [vmem:[#allocation6 + $0x110] sm:$0xff]  ;;  %v303_v10 = vld [vmem:[#allocation6 + $0x108] sm:$0xff]  ;;  %v301_v11 = vld [vmem:[#allocation6 + $0xf8] sm:$0xff]  ;;  %vm809_vm3 = vcmask 523520   ;;  %vm980_vm4 = vcmask 785920   ;;  %vm1151_vm5 = vcmask 1048320  }
  0x5a   : > { %337 = vmatprep.subr.mxu0 %v313_v3  ;;  %v300_v12 = vld [vmem:[#allocation6 + $0xf0] sm:$0xff]  ;;  %v298_v13 = vld [vmem:[#allocation6 + $0xe0] sm:$0xff]  ;;  %v297_v14 = vld [vmem:[#allocation6 + $0xd8] sm:$0xff]  ;;  %v322_v52 = vsub.s32 0, %v321_v51  ;;  %v326_v54 = vsub.s32 1, %v321_v51  ;;  %v330_v61 = vsub.s32 2, %v321_v51 }
  0x5b   : > { %338 = vmatpush1.msra.mxu0 %v312_v4  ;;  %v317_v15 = vld [vmem:[#allocation6 + $0x178] sm:$0xff]  ;;  %v314_v16 = vld [vmem:[#allocation6 + $0x160] sm:$0xff]  ;;  %v295_v17 = vld [vmem:[#allocation6 + $0xc8] sm:$0xff]  ;;  %s1377_s7 = sshll.u32 %s1846_s22, 7  ;;  %s268_s8 = scalar_lea.vmem [#allocation9], %s1359_s16 }
  0x5c   : > { %339 = vmatprep.subr.mxu0 %v310_v5  ;;  %1431 = vmatpush3.msra.mxu1 %v317_v15  ;;  %v294_v18 = vld [vmem:[#allocation6 + $0xc0] sm:$0xff]  ;;  %v311_v19 = vld [vmem:[#allocation6 + $0x148] sm:$0xff]  ;;  %v292_v20 = vld [vmem:[#allocation6 + $0xb0] sm:$0xff]  ;;  %s1262_s29 = sshll.u32 %s268_s8, 4  ;;  %s2073_s23 = scalar_lea.hbm %s2115_s5, %s1377_s7  ;;  %s1263_s29 = int_to_ptr.vmem [resolvable:$true] %s1262_s29 }
  0x5d   : > { %340 = vmatpush1.msra.mxu0 %v309_v6  ;;  %1432 = vmatprep.subr.mxu1 %v1789_v0  ;;  %v291_v21 = vld [vmem:[#allocation6 + $0xa8] sm:$0xff]  ;;  %v308_v22 = vld [vmem:[#allocation6 + $0x130] sm:$0xff]  ;;  %v289_v23 = vld [vmem:[#allocation6 + $0x98] sm:$0xff]  ;;  %s1712_s24 = scalar_lea.vmem %s1263_s29, 128  ;;  %p2131_p0 = scmp.ne.s32.totalorder %s2125_s30, 0 }
  0x5e   : > { %341 = vmatprep.subr.mxu0 %v307_v7  ;;  %1433 = vmatpush3.msra.mxu1 %v314_v16  ;;  %v288_v24 = vld [vmem:[#allocation6 + $0x90] sm:$0xff]  ;;  %v305_v25 = vld [vmem:[#allocation6 + $0x118] sm:$0xff]  ;;  %v286_v26 = vld [vmem:[#allocation6 + $0x80] sm:$0xff]  ;;  %p1713_p11 = scmp.ne.s32.totalorder %s1263_s29, %s1712_s24  ;;  %s1794_s22 = smov [#allocation9]  }
  0x5f   : > { %342 = vmatpush1.msra.mxu0 %v306_v8  ;;  %1434 = vmatprep.subr.mxu1 %v1789_v0  ;;  %v285_v27 = vld [vmem:[#allocation6 + $0x78] sm:$0xff]  ;;  %v302_v28 = vld [vmem:[#allocation6 + $0x100] sm:$0xff]  ;;  %v283_v29 = vld [vmem:[#allocation6 + $0x68] sm:$0xff]  ;;  %s1716_s26 = sshll.u32 %s1794_s22, 4  ;;  %s1717_s26 = int_to_ptr.vmem [resolvable:$false] %s1716_s26 }
  0x60   : > { %343 = vmatprep.subr.mxu0 %v304_v9  ;;  %1435 = vmatpush3.msra.mxu1 %v311_v19  ;;  %v282_v30 = vld [vmem:[#allocation6 + $0x60] sm:$0xff]  ;;  %v299_v31 = vld [vmem:[#allocation6 + $0xe8] sm:$0xff]  ;;  %v280_v32 = vld [vmem:[#allocation6 + $0x50] sm:$0xff]  ;;  %p1714_p1 = pnand %p1713_p11, %p2131_p0  ;;  %s1718_s16 = scalar_lea.vmem %s1717_s26, 256 }
  0x61   : > { %344 = vmatpush1.msra.mxu0 %v303_v10  ;;  %1436 = vmatprep.subr.mxu1 %v1789_v0  ;;  %v279_v33 = vld [vmem:[#allocation6 + $0x48] sm:$0xff]  ;;  %v296_v34 = vld [vmem:[#allocation6 + $0xd0] sm:$0xff]  ;;  %v277_v35 = vld [vmem:[#allocation6 + $0x38] sm:$0xff]  ;;  %p1719_p6 = scmp.lt.s32.totalorder %s1263_s29, %s1717_s26  ;;  %p1720_p12 = scmp.lt.s32.totalorder %s1718_s16, %s1712_s24 }
  0x62   : > { %345 = vmatprep.subr.mxu0 %v301_v11  ;;  %1437 = vmatpush3.msra.mxu1 %v308_v22  ;;  %v276_v36 = vld [vmem:[#allocation6 + $0x30] sm:$0xff]  ;;  %v293_v37 = vld [vmem:[#allocation6 + $0xb8] sm:$0xff]  ;;  %v274_v38 = vld [vmem:[#allocation6 + $0x20] sm:$0xff]  ;;  %p1715_p2 = pneg %p1714_p1 }
  0x63   : > { %346 = vmatpush1.msra.mxu0 %v300_v12  ;;  %1438 = vmatprep.subr.mxu1 %v1789_v0  ;;  %v273_v39 = vld [vmem:[#allocation6 + $0x18] sm:$0xff]  ;;  %v290_v40 = vld [vmem:[#allocation6 + $0xa0] sm:$0xff]  ;;  %v271_v41 = vld [vmem:[#allocation6 + $0x8] sm:$0xff]  ;;  %p1721_p3 = por %p1720_p12, %p1719_p6 }
  0x64   : > { %347 = vmatprep.subr.mxu0 %v298_v13  ;;  %1439 = vmatpush3.msra.mxu1 %v305_v25  ;;  %v270_v42 = vld [vmem:[#allocation6] sm:$0xff]  ;;  %v287_v43 = vld [vmem:[#allocation6 + $0x88] sm:$0xff]  ;;  %v269_v44 = vld [vmem:[%s1949_s27] sm:$0xff]  ;;  %s1249_s27 = scalar_lea.sflag [#allocation5], %s1943_s15 }
  0x65   : > { %348 = vmatpush1.msra.mxu0 %v297_v14  ;;  %1440 = vmatprep.subr.mxu1 %v1789_v0  ;;  %v284_v45 = vld [vmem:[#allocation6 + $0x70] sm:$0xff]  ;;  %v281_v46 = vld [vmem:[#allocation6 + $0x58] sm:$0xff]  ;;  %v278_v47 = vld [vmem:[#allocation6 + $0x40] sm:$0xff]  ;;  %p1722_p9 = pnand %p1721_p3, %p1715_p2 }
  0x66   : > { %349 = vmatprep.subr.mxu0 %v295_v17  ;;  %1441 = vmatpush3.msra.mxu1 %v302_v28  ;;  %v275_v48 = vld [vmem:[#allocation6 + $0x28] sm:$0xff]  ;;  %v272_v49 = vld [vmem:[#allocation6 + $0x10] sm:$0xff] }
  0x67   : > { %350 = vmatpush1.msra.mxu0 %v294_v18  ;;  %1442 = vmatprep.subr.mxu1 %v1789_v0  ;;  %v318_v53 = vld [vmem:[%s2112_s2] sm:$0x7] }
  0x68   : > { %351 = vmatprep.subr.mxu0 %v292_v20  ;;  %1443 = vmatpush3.msra.mxu1 %v299_v31  ;;  %v323_v55 = vrot.slane %v318_v53, %v322_v52  ;;  %v327_v56 = vrot.slane %v318_v53, %v326_v54  ;;  %v331_v62 = vrot.slane %v318_v53, %v330_v61  ;;  %v1164_v61 = vld [vmem:[#allocation8 + $0x50] sm:$0xff] }
  0x69   : > { %352 = vmatpush1.msra.mxu0 %v291_v21  ;;  %1444 = vmatprep.subr.mxu1 %v1789_v0 }
  0x6a   : > { %353 = vmatprep.subr.mxu0 %v289_v23  ;;  %1445 = vmatpush3.msra.mxu1 %v296_v34 }
  0x6b   : > { %354 = vmatpush1.msra.mxu0 %v288_v24  ;;  %1446 = vmatprep.subr.mxu1 %v1789_v0 }
  0x6c   : > { %355 = vmatprep.subr.mxu0 %v286_v26  ;;  %1447 = vmatpush3.msra.mxu1 %v293_v37 }
  0x6d   : > { %356 = vmatpush1.msra.mxu0 %v285_v27  ;;  %1448 = vmatprep.subr.mxu1 %v1789_v0 }
  0x6e   : > { %357 = vmatprep.subr.mxu0 %v283_v29  ;;  %1449 = vmatpush3.msra.mxu1 %v290_v40 }
  0x6f   : > { %358 = vmatpush1.msra.mxu0 %v282_v30  ;;  %1450 = vmatprep.subr.mxu1 %v1789_v0 }
  0x70   : > { %359 = vmatprep.subr.mxu0 %v280_v32  ;;  %1451 = vmatpush3.msra.mxu1 %v287_v43 }
  0x71   : > { %360 = vmatpush1.msra.mxu0 %v279_v33  ;;  %1452 = vmatprep.subr.mxu1 %v1789_v0 }
  0x72   : > { %361 = vmatprep.subr.mxu0 %v277_v35  ;;  %1453 = vmatpush3.msra.mxu1 %v284_v45 }
  0x73   : > { %362 = vmatpush1.msra.mxu0 %v276_v36  ;;  %1454 = vmatprep.subr.mxu1 %v1789_v0 }
  0x74   : > { %363 = vmatprep.subr.mxu0 %v274_v38  ;;  %1455 = vmatpush3.msra.mxu1 %v281_v46 }
  0x75   : > { %364 = vmatpush1.msra.mxu0 %v273_v39  ;;  %1456 = vmatprep.subr.mxu1 %v1789_v0 }
  0x76   : > { %365 = vmatprep.subr.mxu0 %v271_v41  ;;  %1457 = vmatpush3.msra.mxu1 %v278_v47 }
  0x77   : > { %366 = vmatpush1.msra.mxu0 %v270_v42  ;;  %1458 = vmatprep.subr.mxu1 %v1789_v0 }
  0x78   : > { %400 = vmatmul.mubr.f32.vlgmr.msra.gmra.mxu0 %v269_v44  ;;  %1505 = vmatprep.subr.mxu0 %v1789_v0 }
  0x79   : > { %1459 = vmatpush3.msra.mxu1 %v275_v48  ;;  %1537 = vmatprep.mubr.msk.f32.mxu0 %vm1790_vm0, %v1789_v0 }
  0x7a   : > { %1460 = vmatprep.subr.mxu1 %v1789_v0 }
  0x7b   : > { %1461 = vmatpush3.msra.mxu1 %v272_v49 }
  0x7c   : > { %1463 = vmatmul.mubr.f32.vlgmr.msra.gmra.mxu1 %v269_v44  ;;  %1465 = vmatprep.subr.mxu1 %v1789_v0 }
  0x7d   : > { %1467 = vmatprep.mubr.msk.f32.mxu1 %vm1790_vm0, %v1789_v0 }
 0x138   : > { %v401_v57 = vpop.f32.mrf.mxu0 }
 0x139   : > { %v402_v58 = vadd.f32 %v401_v57, %v323_v55  ;;  %v1168_v57 = vld [vmem:[#allocation8 + $0x70] sm:$0xff] }
 0x13a   : > { %v403_v59 = vpop.f32.mrf.mxu0 }
 0x13b   : > { %v404_v60 = vadd.f32 %v403_v59, %v327_v56  ;;  %639 = vrot.lane.b32.xlu1 %v402_v58, %s1791_s10  ;;  %v1169_v56 = vld [vmem:[#allocation8 + $0x78] sm:$0xff]  ;;  %v1166_v59 = vld [vmem:[#allocation8 + $0x60] sm:$0xff] }
 0x13c   : > { %v472_v63 = vpop.f32.mrf.mxu1  ;;  %1506 = vmatpush3.msra.mxu0 %v1169_v56 }
 0x13d   : > { %1466 = vmatpush3.xpose.msk.msra.mxu1 %vm476_vm1, %v404_v60  ;;  %v473_v1 = vadd.f32 %v472_v63, %v331_v62  ;;  %1507 = vmatprep.subr.mxu0 %v1789_v0  ;;  %v1163_v62 = vld [vmem:[#allocation8 + $0x48] sm:$0xff]  ;;  %v1162_v63 = vld [vmem:[#allocation8 + $0x40] sm:$0xff] }
 0x13e   : > { %1470 = vmatprep.subr.mxu1 %v1789_v0  ;;  %v1464_v2 = vpop.f32.mrf.mxu1  ;;  %1508 = vmatpush3.msra.mxu0 %v1168_v57 }
 0x13f   : > { %1509 = vmatprep.subr.mxu0 %v1789_v0  ;;  %v1160_v2 = vld [vmem:[#allocation8 + $0x30] sm:$0xff] }
 0x140   : > { %1468 = vmatmul.mubr.msk.f32.vlgmr.msra.gmra.mxu1 %vm476_vm1, %v402_v58 }
 0x141   : > { %1472 = vmatprep.mubr.msk.f32.mxu1 %vm1790_vm0, %v1789_v0  ;;  %1471 = vmatpush3.msra.mxu1 %v473_v1 }
 0x142   : > { %1475 = vmatprep.subr.mxu1 %v1789_v0 }
 0x1ad   : > { %v640_v11 = vpop.permute.xlu1 %639 }
 0x200   : > { %v549_v3 = vpop.f32.mrf.mxu1 }
 0x201   : > { %v554_v4 = vsel %vm553_vm2, %v549_v3, -inf }
 0x202   : > { %555 = vmax.xlane.f32.xlu0 %v554_v4  ;;  %v1469_v5 = vpop.f32.mrf.mxu1  ;;  %v1158_v4 = vld [vmem:[#allocation8 + $0x20] sm:$0xff] }
 0x218   : > { %641 = vrot.lane.b32.xlu0 %v404_v60, %s1791_s10 }
 0x21c   : > { %727 = vrot.lane.b32.xlu0 %v473_v1, %s1791_s10 }
 0x220   : > { %813 = vrot.lane.b32.xlu0 %v404_v60, %s1792_s12 }
 0x224   : > { %811 = vrot.lane.b32.xlu0 %v402_v58, %s1792_s12 }
 0x28b   : > { %v556_v6 = vpop.xlane.xlu0 %555 }
 0x28c   : > { %v557_v7 = vsub.f32 %v549_v3, %v556_v6  ;;  %v1159_v3 = vld [vmem:[#allocation8 + $0x28] sm:$0xff] }
 0x28e   : > { %v558_v8 = vmul.f32 1.442695, %v557_v7 }
 0x28f   : > { %v642_v9 = vpop.permute.xlu0 %641 }
 0x290   : > { %1616 = vpow2.f32 %v558_v8 }
 0x293   : > { %v728_v12 = vpop.permute.xlu0 %727 }
 0x297   : > { %v814_v21 = vpop.permute.xlu0 %813 }
 0x29b   : > { %v812_v23 = vpop.permute.xlu0 %811 }
 0x29d   : > { %v2000_v10 = vpop.eup %1616 }
 0x29e   : > { %1473 = vmatmul.mubr.msk.f32.vlgmr.msra.gmra.mxu1 %vm553_vm2, %v2000_v10  ;;  %v560_v53 = vsel %vm553_vm2, %v2000_v10, 0.0 }
 0x29f   : > { %1476 = vmatpush3.xpose.msk.msra.mxu1 %vm476_vm1, %v642_v9  ;;  %1477 = vmatprep.mubr.msk.f32.mxu1 %vm1790_vm0, %v1789_v0 }
 0x2a0   : > { %1480 = vmatprep.subr.mxu1 %v1789_v0 }
 0x2a2   : > { %1478 = vmatmul.mubr.msk.f32.vlgmr.msra.gmra.mxu1 %vm476_vm1, %v640_v11  ;;  %v1157_v11 = vld [vmem:[#allocation8 + $0x18] sm:$0xff] }
 0x2a3   : > { %1481 = vmatpush3.msra.mxu1 %v728_v12  ;;  %1482 = vmatprep.mubr.msk.f32.mxu1 %vm1790_vm0, %v1789_v0  ;;  %v1156_v12 = vld [vmem:[#allocation8 + $0x10] sm:$0xff] }
 0x2a4   : > { %1485 = vmatprep.subr.mxu1 %v1789_v0 }
 0x35e   : > { %v2012_v13 = vpop.f32.mrf.mxu1 }
 0x360   : > { %v1474_v14 = vpop.f32.mrf.mxu1 }
 0x361   : > { %v1155_v14 = vld [vmem:[#allocation8 + $0x8] sm:$0xff] }
 0x362   : > { %v713_v15 = vpop.f32.mrf.mxu1 }
 0x363   : > { %v717_v16 = vsel %vm553_vm2, %v713_v15, -inf }
 0x364   : > { %718 = vmax.xlane.f32.xlu1 %v717_v16  ;;  %v1479_v17 = vpop.f32.mrf.mxu1 }
 0x375   : > { %898 = vrot.lane.b32.xlu1 %v473_v1, %s1792_s12 }
 0x379   : > { %984 = vrot.lane.b32.xlu1 %v404_v60, %s1793_s13  ;;  %v1165_v60 = vld [vmem:[#allocation8 + $0x58] sm:$0xff] }
 0x37d   : > { %982 = vrot.lane.b32.xlu1 %v402_v58, %s1793_s13  ;;  %v1167_v58 = vld [vmem:[#allocation8 + $0x68] sm:$0xff] }
 0x37e   : > { %1510 = vmatpush3.msra.mxu0 %v1167_v58 }
 0x37f   : > { %1511 = vmatprep.subr.mxu0 %v1789_v0 }
 0x380   : > { %1512 = vmatpush3.msra.mxu0 %v1166_v59 }
 0x381   : > { %1513 = vmatprep.subr.mxu0 %v1789_v0 }
 0x382   : > { %1514 = vmatpush3.msra.mxu0 %v1165_v60 }
 0x383   : > { %1515 = vmatprep.subr.mxu0 %v1789_v0 }
 0x384   : > { %1516 = vmatpush3.msra.mxu0 %v1164_v61 }
 0x385   : > { %1517 = vmatprep.subr.mxu0 %v1789_v0 }
 0x386   : > { %1518 = vmatpush3.msra.mxu0 %v1163_v62 }
 0x387   : > { %1519 = vmatprep.subr.mxu0 %v1789_v0 }
 0x388   : > { %1520 = vmatpush3.msra.mxu0 %v1162_v63 }
 0x389   : > { %1521 = vmatprep.subr.mxu0 %v1789_v0 }
 0x3ed   : > { %v719_v18 = vpop.xlane.xlu1 %718 }
 0x3ee   : > { %v720_v19 = vsub.f32 %v713_v15, %v719_v18 }
 0x3f0   : > { %v721_v20 = vmul.f32 1.442695, %v720_v19 }
 0x3f1   : > { %v899_v24 = vpop.permute.xlu1 %898 }
 0x3f2   : > { %1618 = vpow2.f32 %v721_v20 }
 0x3f5   : > { %v985_v34 = vpop.permute.xlu1 %984 }
 0x3f9   : > { %v983_v36 = vpop.permute.xlu1 %982 }
 0x3ff   : > { %v1619_v22 = vpop.eup %1618 }
 0x400   : > { %1483 = vmatmul.mubr.msk.f32.vlgmr.msra.gmra.mxu1 %vm553_vm2, %v1619_v22  ;;  %v723_v30 = vsel %vm553_vm2, %v1619_v22, 0.0 }
 0x401   : > { %1486 = vmatpush3.xpose.msk.msra.mxu1 %vm476_vm1, %v814_v21  ;;  %1487 = vmatprep.mubr.msk.f32.mxu1 %vm1790_vm0, %v1789_v0  ;;  %v1375_v21 = vld [vmem:[%s2114_s4] ss:$0 sm:$0xff] }
 0x402   : > { %1490 = vmatprep.subr.mxu1 %v1789_v0 }
 0x404   : > { %1488 = vmatmul.mubr.msk.f32.vlgmr.msra.gmra.mxu1 %vm476_vm1, %v812_v23 }
 0x405   : > { %1491 = vmatpush3.msra.mxu1 %v899_v24  ;;  %1492 = vmatprep.mubr.msk.f32.mxu1 %vm1790_vm0, %v1789_v0 }
 0x406   : > { %1495 = vmatprep.subr.mxu1 %v1789_v0 }
 0x4c0   : > { %v799_v25 = vpop.f32.mrf.mxu1 }
 0x4c2   : > { %v1484_v26 = vpop.f32.mrf.mxu1 }
 0x4c4   : > { %v885_v27 = vpop.f32.mrf.mxu1 }
 0x4c5   : > { %v889_v28 = vsel %vm553_vm2, %v885_v27, -inf }
 0x4c6   : > { %890 = vmax.xlane.f32.xlu0 %v889_v28  ;;  %v1489_v29 = vpop.f32.mrf.mxu1 }
 0x4dc   : > { %1069 = vrot.lane.b32.xlu0 %v473_v1, %s1793_s13  ;;  %v1161_v1 = vld [vmem:[#allocation8 + $0x38] sm:$0xff] }
 0x4dd   : > { %1522 = vmatpush3.msra.mxu0 %v1161_v1 }
 0x4de   : > { %1523 = vmatprep.subr.mxu0 %v1789_v0 }
 0x4df   : > { %1524 = vmatpush3.msra.mxu0 %v1160_v2 }
 0x4e0   : > { %1525 = vmatprep.subr.mxu0 %v1789_v0 }
 0x4e1   : > { %1526 = vmatpush3.msra.mxu0 %v1159_v3 }
 0x4e2   : > { %1527 = vmatprep.subr.mxu0 %v1789_v0 }
 0x4e3   : > { %1528 = vmatpush3.msra.mxu0 %v1158_v4 }
 0x4e4   : > { %1529 = vmatprep.subr.mxu0 %v1789_v0 }
 0x4e5   : > { %1530 = vmatpush3.msra.mxu0 %v1157_v11 }
 0x4e6   : > { %1531 = vmatprep.subr.mxu0 %v1789_v0 }
 0x4e7   : > { %1532 = vmatpush3.msra.mxu0 %v1156_v12 }
 0x4e8   : > { %1533 = vmatprep.subr.mxu0 %v1789_v0 }
 0x4e9   : > { %1534 = vmatpush3.msra.mxu0 %v1155_v14 }
 0x4ea   : > { %1535 = vmatprep.subr.mxu0 %v1789_v0 }
 0x4fb   : > { %724 = vadd.xlane.f32.xlu0 %v723_v30 }
 0x54f   : > { %v891_v31 = vpop.xlane.xlu0 %890 }
 0x550   : > { %v892_v32 = vsub.f32 %v885_v27, %v891_v31 }
 0x552   : > { %v893_v33 = vmul.f32 1.442695, %v892_v32 }
 0x553   : > { %v1070_v37 = vpop.permute.xlu0 %1069 }
 0x554   : > { %1620 = vpow2.f32 %v893_v33 }
 0x561   : > { %v1621_v35 = vpop.eup %1620 }
 0x562   : > { %1493 = vmatmul.mubr.msk.f32.vlgmr.msra.gmra.mxu1 %vm553_vm2, %v1621_v35  ;;  %v895_v43 = vsel %vm553_vm2, %v1621_v35, 0.0 }
 0x563   : > { %1496 = vmatpush3.xpose.msk.msra.mxu1 %vm476_vm1, %v985_v34  ;;  %1497 = vmatprep.mubr.msk.f32.mxu1 %vm1790_vm0, %v1789_v0 }
 0x564   : > { %1500 = vmatprep.subr.mxu1 %v1789_v0 }
 0x566   : > { %1498 = vmatmul.mubr.msk.f32.vlgmr.msra.gmra.mxu1 %vm476_vm1, %v983_v36 }
 0x567   : > { %1501 = vmatpush3.msra.mxu1 %v1070_v37  ;;  %1502 = vmatprep.mubr.msk.f32.mxu1 %vm1790_vm0, %v1789_v0 }
 0x584   : > { %v725_v51 = vpop.xlane.xlu0 %724 }
 0x622   : > { %v970_v38 = vpop.f32.mrf.mxu1 }
 0x624   : > { %v1494_v39 = vpop.f32.mrf.mxu1 }
 0x626   : > { %v1056_v40 = vpop.f32.mrf.mxu1 }
 0x627   : > { %v1060_v41 = vsel %vm553_vm2, %v1056_v40, -inf }
 0x628   : > { %1061 = vmax.xlane.f32.xlu1 %v1060_v41  ;;  %v1499_v42 = vpop.f32.mrf.mxu1 }
 0x62c   : > { %896 = vadd.xlane.f32.xlu1 %v895_v43 }
 0x6b1   : > { %v1062_v44 = vpop.xlane.xlu1 %1061 }
 0x6b2   : > { %v1063_v45 = vsub.f32 %v1056_v40, %v1062_v44 }
 0x6b4   : > { %v1064_v46 = vmul.f32 1.442695, %v1063_v45 }
 0x6b5   : > { %v897_v47 = vpop.xlane.xlu1 %896 }
 0x6b6   : > { %1622 = vpow2.f32 %v1064_v46 }
 0x6b7   : > { %1624 = vrcp.f32 %v897_v47 }
 0x6b8   : > { %1626 = vrcp.f32 %v725_v51 }
 0x6c3   : > { %v1623_v48 = vpop.eup %1622 }
 0x6c4   : > { %v1625_v49 = vpop.eup %1624  ;;  %1503 = vmatmul.mubr.msk.f32.vlgmr.msra.gmra.mxu1 %vm553_vm2, %v1623_v48  ;;  %v1066_v50 = vsel %vm553_vm2, %v1623_v48, 0.0 }
 0x6c5   : > { %1067 = vadd.xlane.f32.xlu1 %v1066_v50  ;;  %v975_v52 = vmul.f32 %v1625_v49, %v970_v38  ;;  %v1627_v54 = vpop.eup %1626 }
 0x6c6   : > { %v804_v55 = vmul.f32 %v1627_v54, %v799_v25 }
 0x6c7   : > { %977 = vrot.lane.b32.xlu0 %v975_v52, %s1792_s12 }
 0x6c9   : > { %561 = vadd.xlane.f32.xlu1 %v560_v53 }
 0x6da   : > { %806 = vrot.lane.b32.xlu1 %v804_v55, %s1793_s13 }
 0x739   : > { %v978_v10 = vpop.permute.xlu0 %977 }
 0x74e   : > { %v1068_v5 = vpop.xlane.xlu1 %1067 }
 0x752   : > { %v562_v6 = vpop.xlane.xlu1 %561 }
 0x753   : > { %1628 = vrcp.f32 %v562_v6 }
 0x754   : > { %1630 = vrcp.f32 %v1068_v5 }
 0x756   : > { %v807_v9 = vpop.permute.xlu1 %806 }
 0x760   : > { %v1629_v7 = vpop.eup %1628 }
 0x761   : > { %v637_v8 = vmul.f32 %v1629_v7, %v2012_v13  ;;  %v1154_v13 = vld [vmem:[#allocation8] sm:$0xff]  ;;  %v1631_v15 = vpop.eup %1630 }
 0x762   : > { %1536 = vmatpush3.msra.mxu0 %v1154_v13 }
 0x763   : > { %638 = vst.msk [vmem:[#allocation2] sm:$0xff] %vm476_vm1, %v637_v8 }
 0x764   : > { %810 = vst.msk [vmem:[#allocation2] sm:$0xff] %vm809_vm3, %v807_v9 }
 0x765   : > { %981 = vst.msk [vmem:[#allocation2] sm:$0xff] %vm980_vm4, %v978_v10 }
 0x784   : > { %v1141_v16 = vpop.f32.mrf.mxu1 }
 0x785   : > { %v1146_v17 = vmul.f32 %v1631_v15, %v1141_v16 }
 0x786   : > { %v1504_v18 = vpop.f32.mrf.mxu1 }
 0x787   : > { %1148 = vrot.lane.b32.xlu1 %v1146_v17, %s1791_s10 }
 0x7f9   : > { %v1149_v19 = vpop.permute.xlu1 %1148 }
 0x7fa   : > { %1152 = vst.msk [vmem:[#allocation2] sm:$0xff] %vm1151_vm5, %v1149_v19 }
 0x801   : > { %v1153_v20 = vld [vmem:[#allocation2] sm:$0xff] }
 0x802   : > { %1538 = vmatmul.mubr.f32.vlgmr.msra.gmra.mxu0 %v1153_v20 }
 0x8c2   : > { %v1243_v0 = vpop.f32.mrf.mxu0 }
 0x8c3   : > { %v1244_v22 = vadd.f32 %v1375_v21, %v1243_v0 }
 0x8c4   : > { %v1539_v23 = vpop.f32.mrf.mxu0 }
 0x8c5   : > { %1247 = vst [vmem:[%s268_s8] sm:$0xff] %v1244_v22 }
 0x8c6   : > { %1725 = shalt.err (!%p1722_p9)
}
 0x8c7   : > { %s1726_s10 = scalar_lea.hbm %s2073_s23, 128  ;;  %s1730_s13 = scalar_lea.hbm %s2115_s5, 256 }
 0x8c8   : > { %p1727_p13 = scmp.ne.s32.totalorder %s2073_s23, %s1726_s10  ;;  %p1731_p4 = scmp.lt.s32.totalorder %s2073_s23, %s2115_s5 }
 0x8c9   : > { %p1732_p8 = scmp.lt.s32.totalorder %s1730_s13, %s1726_s10 }
 0x8ca   : > { %p1728_p5 = pnand %p1727_p13, %p2131_p0 }
 0x8cb   : > { %p1733_p7 = por %p1732_p8, %p1731_p4 }
 0x8cc   : > { %p1729_p10 = pneg %p1728_p5 }
 0x8ce   : > { %p1734_p11 = pnand %p1733_p7, %p1729_p10 }
 0x8d0   : > { %1737 = shalt.err (!%p1734_p11)
}
 0x8d1   : > { %1550 = dma.vmem_to_hbm [thread:$0]  (%p2131_p0), %s1263_s29, 128, %s2073_s23, %s1249_s27  }
 0x8d2 PF: > { %s1274_s7 = sand.u32 1, %s1768_s18   ;;  %p2132_p1 = scmp.ne.s32.totalorder %s2121_s25, 0 }
 0x8d3   : > { %p2133_p2 = scmp.ge.s32.totalorder %s1780_s21, 2  ;;  %s1275_s8 = scalar_lea.sflag [#allocation5], %s1274_s7 }
 0x8d5   : > { %p1564_p6 = pnand %p2133_p2, %p2132_p1 }
 0x8d7   : > { %p1565_p12 = pneg %p1564_p6 }
 0x8d9   : > { %1763 = dma.done.wait (%p1565_p12), %s1275_s8, 128  }
 0x8da   : > { %1765 = vsyncadd (%p1565_p12), %s1275_s8, 4294967168  ;;  %p19_p3 = scmp.ge.s32.totalorder %s1897_s17, 4   ;;  %s2134_s18 = smov %s1772_s19 }
 0x8db   : > { %s2135_s19 = smov %s1776_s20  ;;  %s2136_s20 = smov %s1906_s28 }
 0x8dc   : > { %s2137_s21 = smov %s1897_s17  ;;  %21 = sbr.rel (!%p19_p3) target bundleno = 6 (0x6), region = 93 }
 0x8e1   :  { %1280 = vsyncpa [#allocation4], 1 }
 0x8e2   :  { %1282 = vsyncpa [#allocation4 + $0x1], 1 }
 0x8e3   :  { %1283 = vsyncpa [#allocation7], 1 }
 0x8e4   :  { %1284 = vsyncpa [#allocation5], 1 }
 0x8e5   :  { %1286 = vsyncpa [#allocation5 + $0x1], 1 }

</bundles_post_ra>
